<compile_context>
chip_gen: v7x
topology: tpu7x:2x2x1
jax: 0.10.0
libtpu: 0.0.40
codegen_flags: <defaults>
</compile_context>

<pallas_src>
import functools

import jax
import jax.numpy as jnp
from jax.experimental import pallas as pl
from jax.experimental.pallas import tpu as pltpu


def _round_up(x, m):
    return ((x + m - 1) // m) * m


def gated_cnn_classifier_kernel(x_ref, sidx_ref, w_ref, wcls_ref, bcls_ref, out_ref, *,
                                seq_len, seq_valid, kernel_size, batch_tile, hp):
    """One batch tile: flattened gated-conv -> max-pool -> linear.

    x_ref:    (1, Bt*seq_len + 2*pad, H)  bf16  zero-padded flattened batch tile
    sidx_ref: (Bt*seq_len, 1)             int32 per-row position inside its batch element
    w_ref:    (K, H, 2*Hp)                bf16  fused conv|gate weight (zero-padded columns)
    wcls_ref: (Hp, Cp)                    bf16  classifier weight (zero-padded)
    bcls_ref: (1, Cp)                     f32   classifier bias (zero-padded)
    out_ref:  (1, Bt, Cp)                 f32   logits
    """
    pad = (kernel_size - 1) // 2
    mt = batch_tile * seq_len

    x = x_ref[0]                                   # (mt + 2*pad, H) bf16
    s_idx = sidx_ref[...]                          # (mt, 1) int32

    acc = jnp.zeros((mt, 2 * hp), dtype=jnp.float32)
    for k in range(kernel_size):                   # static unroll; K is small
        d = k - pad
        xs = x[k:k + mt, :]                        # shifted rows (mt, H)
        if d != 0:
            # zero rows whose shifted source falls outside their own batch element
            valid = jnp.logical_and(s_idx + d >= 0, s_idx + d < seq_len)
            xs = jnp.where(valid, xs, jnp.zeros_like(xs))
        acc = acc + jnp.dot(xs, w_ref[k], preferred_element_type=jnp.float32)

    a = acc[:, :hp]                                # conv branch   (mt, Hp), lane-aligned split
    g = acc[:, hp:]                                # gate branch   (mt, Hp)
    y = a * jax.nn.sigmoid(g)                      # GatedCNN output, f32

    if seq_valid < seq_len:                        # mask sequence positions added by padding
        y = jnp.where(s_idx < seq_valid, y, -jnp.inf)

    y3 = y.reshape(batch_tile, seq_len, hp)        # inner dim is a multiple of 8 sublanes
    pooled = jnp.max(y3, axis=1)                   # MaxPool1d over sequence -> (Bt, Hp)

    logits = jnp.dot(pooled.astype(jnp.bfloat16), wcls_ref[...],
                     preferred_element_type=jnp.float32) + bcls_ref[...]
    out_ref[0] = logits                            # lane-dense (Bt, Cp) store


def torch_model_forward(tokens, params, *, kernel_size, batch_tile=None):
    """tokens: (B, S) int32; returns logits (B, class_num) float32."""
    emb = params["embedding"]            # (vocab+1, H), row 0 == 0 (padding_idx)
    wc = params["cnn_w"]                 # (K, H, H)  tap-major, (in, out) per tap
    wg = params["gate_w"]                # (K, H, H)
    wcls = params["classify_w"]          # (H, C)
    bcls = params["classify_b"]          # (1, C)

    B, S = tokens.shape
    H = emb.shape[1]
    C = wcls.shape[1]
    K = kernel_size
    assert K % 2 == 1, "only odd kernel_size matches the PyTorch 'same'-style padding"
    pad = (K - 1) // 2

    S_pad = _round_up(S, 8)              # sublane-align the per-element sequence length
    Hp = _round_up(H, 128)               # lane-align conv/gate output channels
    Cp = _round_up(C, 128)               # lane-dense logits

    if batch_tile is None:
        # fold enough batch elements per grid step to fill the MXU M dim
        batch_tile = max(1, min(B, max(1, 256 // S_pad)))
    Bt = batch_tile
    nb = (B + Bt - 1) // Bt
    B_pad = nb * Bt
    Mt = Bt * S_pad

    # --- parameters: fuse conv|gate, pad to lane-dense widths, cast to bf16 ---
    w_fused = jnp.zeros((K, H, 2 * Hp), jnp.bfloat16)
    w_fused = w_fused.at[:, :, :H].set(wc.astype(jnp.bfloat16))
    w_fused = w_fused.at[:, :, Hp:Hp + H].set(wg.astype(jnp.bfloat16))
    wcls_p = jnp.zeros((Hp, Cp), jnp.bfloat16).at[:H, :C].set(wcls.astype(jnp.bfloat16))
    bcls_p = jnp.zeros((1, Cp), jnp.float32).at[:, :C].set(bcls.astype(jnp.float32))

    # --- activations: gather + bf16 cast + flatten + tiny conv-halo pad (fuses under jit) ---
    tok = jnp.pad(tokens, ((0, B_pad - B), (0, S_pad - S)))      # token 0 -> zero embedding row
    x = jnp.take(emb, tok, axis=0).astype(jnp.bfloat16)          # (B_pad, S_pad, H)
    x = x.reshape(nb, Mt, H)
    x = jnp.pad(x, ((0, 0), (pad, pad), (0, 0)))                 # (nb, Mt + 2*pad, H)

    # per-row position inside its batch element (drives the per-tap boundary masks)
    s_idx = (jnp.arange(Mt, dtype=jnp.int32) % S_pad).reshape(Mt, 1)

    kernel = functools.partial(
        gated_cnn_classifier_kernel, seq_len=S_pad, seq_valid=S,
        kernel_size=K, batch_tile=Bt, hp=Hp)

    out = pl.pallas_call(
        kernel,
        out_shape=jax.ShapeDtypeStruct((nb, Bt, Cp), jnp.float32),
        grid=(nb,),
        in_specs=[
            pl.BlockSpec((1, Mt + 2 * pad, H), lambda i: (i, 0, 0)),
            pl.BlockSpec((Mt, 1), lambda i: (0, 0)),
            pl.BlockSpec((K, H, 2 * Hp), lambda i: (0, 0, 0)),
            pl.BlockSpec((Hp, Cp), lambda i: (0, 0)),
            pl.BlockSpec((1, Cp), lambda i: (0, 0)),
        ],
        out_specs=pl.BlockSpec((1, Bt, Cp), lambda i: (i, 0, 0)),
        compiler_params=pltpu.CompilerParams(
            dimension_semantics=("parallel",)),
    )(x, s_idx, w_fused, wcls_p, bcls_p)

    return out.reshape(B_pad, Cp)[:B, :C]


def reference_forward(tokens, params, *, kernel_size):
    """Pure-JAX reference (gated_cnn + max pool + linear), mirroring the kernel's bf16 casts."""
    f32 = jnp.float32
    emb = params["embedding"]
    wc = params["cnn_w"].astype(jnp.bfloat16).astype(f32)
    wg = params["gate_w"].astype(jnp.bfloat16).astype(f32)
    wcls = params["classify_w"].astype(jnp.bfloat16).astype(f32)
    bcls = params["classify_b"]
    pad = (kernel_size - 1) // 2

    x = jnp.take(emb, tokens, axis=0).astype(jnp.bfloat16).astype(f32)   # (B, S, H)
    x_pad = jnp.pad(x, ((0, 0), (pad, pad), (0, 0)))
    S = x.shape[1]

    def conv(w):
        out = 0.0
        for k in range(kernel_size):
            out = out + jnp.einsum("bsh,ho->bso", x_pad[:, k:k + S, :], w[k])
        return out

    a = conv(wc)
    b = jax.nn.sigmoid(conv(wg))
    y = a * b
    pooled = jnp.max(y, axis=1)                          # MaxPool1d(S) + squeeze
    pooled = pooled.astype(jnp.bfloat16).astype(f32)
    return pooled @ wcls + bcls[0]


def init_params(key, vocab_size, hidden_size, class_num, kernel_size):
    k0, k1, k2, k3, k4 = jax.random.split(key, 5)
    emb = jax.random.normal(k0, (vocab_size + 1, hidden_size), jnp.float32) * 0.1
    emb = emb.at[0].set(0.0)  # padding_idx=0
    # Conv1d weights stored tap-major as (K, H_in, H_out): w[k] = torch_weight[:, :, k].T
    cnn_w = jax.random.normal(k1, (kernel_size, hidden_size, hidden_size), jnp.float32) * 0.05
    gate_w = jax.random.normal(k2, (kernel_size, hidden_size, hidden_size), jnp.float32) * 0.05
    classify_w = jax.random.normal(k3, (hidden_size, class_num), jnp.float32) * 0.1
    classify_b = jax.random.normal(k4, (1, class_num), jnp.float32) * 0.1
    return {"embedding": emb, "cnn_w": cnn_w, "gate_w": gate_w,
            "classify_w": classify_w, "classify_b": classify_b}


if __name__ == "__main__":
    # config = {'hidden_size': 32, 'vocab_size': 30, 'class_num': 5,
    #           'model_type': 'gated_cnn', 'num_layers': 2,   # num_layers unused by GatedCNN
    #           'kernel_size': 3, 'pooling_style': 'max'}
    B, S, H, K, C, VOCAB = 2, 8, 32, 3, 5, 30

    key = jax.random.PRNGKey(0)
    pkey, tkey = jax.random.split(key)
    params = init_params(pkey, VOCAB, H, C, K)
    tokens = jax.random.randint(tkey, (B, S), 0, VOCAB + 1, dtype=jnp.int32)

    forward = jax.jit(functools.partial(torch_model_forward, kernel_size=K))
    logits = jax.block_until_ready(forward(tokens, params))

    ref = reference_forward(tokens, params, kernel_size=K)
    assert logits.shape == (B, C)
    assert jnp.allclose(logits, ref, atol=2e-3, rtol=2e-3), "mismatch vs. reference"

    # TODO(synk): training branch (cross_entropy loss when target is given) not kernelized.
    print("KERNEL_OK")
</pallas_src>

<mosaic_0001>
module attributes {stable_mosaic.version = 11 : i64} {
  func.func @gated_cnn_classifier_kernel(%arg0: i32, %arg1: memref<1x18x32xbf16, #tpu.memory_space<vmem>>, %arg2: memref<16x1xi32, #tpu.memory_space<vmem>>, %arg3: memref<3x32x256xbf16, #tpu.memory_space<vmem>>, %arg4: memref<128x128xbf16, #tpu.memory_space<vmem>>, %arg5: memref<1x128xf32, #tpu.memory_space<vmem>>, %arg6: memref<1x2x128xf32, #tpu.memory_space<vmem>>) attributes {dimension_semantics = [#tpu.dimension_semantics<parallel>], iteration_bounds = array<i64: 1>, scalar_prefetch = 0 : i64, scratch_operands = 0 : i64, tpu.core_type = #tpu.core_type<tc>, window_params = [{transform_indices = @transform_0, window_bounds = array<i64: 1, 18, 32>}, {pipeline_mode = #tpu.pipeline_mode<synchronous>, transform_indices = @transform_1, window_bounds = array<i64: 16, 1>}, {pipeline_mode = #tpu.pipeline_mode<synchronous>, transform_indices = @transform_2, window_bounds = array<i64: 3, 32, 256>}, {pipeline_mode = #tpu.pipeline_mode<synchronous>, transform_indices = @transform_3, window_bounds = array<i64: 128, 128>}, {pipeline_mode = #tpu.pipeline_mode<synchronous>, transform_indices = @transform_4, window_bounds = array<i64: 1, 128>}, {transform_indices = @transform_5, window_bounds = array<i64: 1, 2, 128>}]} {
    %c0 = arith.constant 0 : index
    %c0_0 = arith.constant 0 : index
    %c0_1 = arith.constant 0 : index
    %0 = vector.load %arg1[%c0, %c0_0, %c0_1] : memref<1x18x32xbf16, #tpu.memory_space<vmem>>, vector<1x18x32xbf16>
    %1 = vector.shape_cast %0 : vector<1x18x32xbf16> to vector<18x32xbf16>
    %c0_2 = arith.constant 0 : index
    %c0_3 = arith.constant 0 : index
    %2 = vector.load %arg2[%c0_2, %c0_3] : memref<16x1xi32, #tpu.memory_space<vmem>>, vector<16x1xi32>
    %cst = arith.constant 0.000000e+00 : f32
    %3 = vector.broadcast %cst : f32 to vector<16x256xf32>
    %4 = vector.extract_strided_slice %1 {offsets = [0, 0], sizes = [16, 32], strides = [1, 1]} : vector<18x32xbf16> to vector<16x32xbf16>
    %c-1_i32 = arith.constant -1 : i32
    %5 = vector.broadcast %c-1_i32 : i32 to vector<16x1xi32>
    %6 = arith.addi %2, %5 : vector<16x1xi32>
    %c0_i32 = arith.constant 0 : i32
    %7 = vector.broadcast %c0_i32 : i32 to vector<16x1xi32>
    %8 = arith.cmpi sge, %6, %7 : vector<16x1xi32>
    %c-1_i32_4 = arith.constant -1 : i32
    %9 = vector.broadcast %c-1_i32_4 : i32 to vector<16x1xi32>
    %10 = arith.addi %2, %9 : vector<16x1xi32>
    %c8_i32 = arith.constant 8 : i32
    %11 = vector.broadcast %c8_i32 : i32 to vector<16x1xi32>
    %12 = arith.cmpi slt, %10, %11 : vector<16x1xi32>
    %13 = arith.andi %8, %12 : vector<16x1xi1>
    %cst_5 = arith.constant 0.000000e+00 : bf16
    %14 = vector.broadcast %cst_5 : bf16 to vector<16x32xbf16>
    %15 = vector.shape_cast %13 : vector<16x1xi1> to vector<16x1xi1>
    %16 = vector.broadcast %15 : vector<16x1xi1> to vector<16x32xi1>
    %17 = arith.select %16, %4, %14 : vector<16x32xi1>, vector<16x32xbf16>
    %c0_6 = arith.constant 0 : index
    %c0_7 = arith.constant 0 : index
    %c0_8 = arith.constant 0 : index
    %18 = vector.load %arg3[%c0_6, %c0_7, %c0_8] : memref<3x32x256xbf16, #tpu.memory_space<vmem>>, vector<1x32x256xbf16>
    %19 = vector.shape_cast %18 : vector<1x32x256xbf16> to vector<32x256xbf16>
    %cst_9 = arith.constant dense<0.000000e+00> : vector<16x256xf32>
    %20 = tpu.matmul %17, %19, %cst_9 {dimension_numbers = #tpu.dot_dimension_numbers<[1], [0], [0], [1], [0, 0, 1, 1], [], []>} : vector<16x32xbf16>, vector<32x256xbf16>, vector<16x256xf32> -> vector<16x256xf32>
    %21 = arith.addf %3, %20 : vector<16x256xf32>
    %22 = vector.extract_strided_slice %1 {offsets = [1, 0], sizes = [16, 32], strides = [1, 1]} : vector<18x32xbf16> to vector<16x32xbf16>
    %c1 = arith.constant 1 : index
    %c0_10 = arith.constant 0 : index
    %c0_11 = arith.constant 0 : index
    %23 = vector.load %arg3[%c1, %c0_10, %c0_11] : memref<3x32x256xbf16, #tpu.memory_space<vmem>>, vector<1x32x256xbf16>
    %24 = vector.shape_cast %23 : vector<1x32x256xbf16> to vector<32x256xbf16>
    %cst_12 = arith.constant dense<0.000000e+00> : vector<16x256xf32>
    %25 = tpu.matmul %22, %24, %cst_12 {dimension_numbers = #tpu.dot_dimension_numbers<[1], [0], [0], [1], [0, 0, 1, 1], [], []>} : vector<16x32xbf16>, vector<32x256xbf16>, vector<16x256xf32> -> vector<16x256xf32>
    %26 = arith.addf %21, %25 : vector<16x256xf32>
    %27 = vector.extract_strided_slice %1 {offsets = [2, 0], sizes = [16, 32], strides = [1, 1]} : vector<18x32xbf16> to vector<16x32xbf16>
    %c1_i32 = arith.constant 1 : i32
    %28 = vector.broadcast %c1_i32 : i32 to vector<16x1xi32>
    %29 = arith.addi %2, %28 : vector<16x1xi32>
    %c0_i32_13 = arith.constant 0 : i32
    %30 = vector.broadcast %c0_i32_13 : i32 to vector<16x1xi32>
    %31 = arith.cmpi sge, %29, %30 : vector<16x1xi32>
    %c1_i32_14 = arith.constant 1 : i32
    %32 = vector.broadcast %c1_i32_14 : i32 to vector<16x1xi32>
    %33 = arith.addi %2, %32 : vector<16x1xi32>
    %c8_i32_15 = arith.constant 8 : i32
    %34 = vector.broadcast %c8_i32_15 : i32 to vector<16x1xi32>
    %35 = arith.cmpi slt, %33, %34 : vector<16x1xi32>
    %36 = arith.andi %31, %35 : vector<16x1xi1>
    %cst_16 = arith.constant 0.000000e+00 : bf16
    %37 = vector.broadcast %cst_16 : bf16 to vector<16x32xbf16>
    %38 = vector.shape_cast %36 : vector<16x1xi1> to vector<16x1xi1>
    %39 = vector.broadcast %38 : vector<16x1xi1> to vector<16x32xi1>
    %40 = arith.select %39, %27, %37 : vector<16x32xi1>, vector<16x32xbf16>
    %c2 = arith.constant 2 : index
    %c0_17 = arith.constant 0 : index
    %c0_18 = arith.constant 0 : index
    %41 = vector.load %arg3[%c2, %c0_17, %c0_18] : memref<3x32x256xbf16, #tpu.memory_space<vmem>>, vector<1x32x256xbf16>
    %42 = vector.shape_cast %41 : vector<1x32x256xbf16> to vector<32x256xbf16>
    %cst_19 = arith.constant dense<0.000000e+00> : vector<16x256xf32>
    %43 = tpu.matmul %40, %42, %cst_19 {dimension_numbers = #tpu.dot_dimension_numbers<[1], [0], [0], [1], [0, 0, 1, 1], [], []>} : vector<16x32xbf16>, vector<32x256xbf16>, vector<16x256xf32> -> vector<16x256xf32>
    %44 = arith.addf %26, %43 : vector<16x256xf32>
    %45 = vector.extract_strided_slice %44 {offsets = [0, 0], sizes = [16, 128], strides = [1, 1]} : vector<16x256xf32> to vector<16x128xf32>
    %46 = vector.extract_strided_slice %44 {offsets = [0, 128], sizes = [16, 128], strides = [1, 1]} : vector<16x256xf32> to vector<16x128xf32>
    %47 = arith.negf %46 : vector<16x128xf32>
    %48 = math.exp %47 : vector<16x128xf32>
    %cst_20 = arith.constant 1.000000e+00 : f32
    %49 = vector.broadcast %cst_20 : f32 to vector<16x128xf32>
    %50 = arith.addf %49, %48 : vector<16x128xf32>
    %51 = arith.divf %49, %50 : vector<16x128xf32>
    %52 = arith.mulf %45, %51 : vector<16x128xf32>
    %53 = vector.shape_cast %52 : vector<16x128xf32> to vector<2x8x128xf32>
    %cst_21 = arith.constant dense<0xFF800000> : vector<2x128xf32>
    %54 = vector.multi_reduction <maximumf>, %53, %cst_21 [1] : vector<2x8x128xf32> to vector<2x128xf32>
    %55 = arith.truncf %54 : vector<2x128xf32> to vector<2x128xbf16>
    %c0_22 = arith.constant 0 : index
    %c0_23 = arith.constant 0 : index
    %56 = vector.load %arg4[%c0_22, %c0_23] : memref<128x128xbf16, #tpu.memory_space<vmem>>, vector<128x128xbf16>
    %cst_24 = arith.constant dense<0.000000e+00> : vector<2x128xf32>
    %57 = tpu.matmul %55, %56, %cst_24 {dimension_numbers = #tpu.dot_dimension_numbers<[1], [0], [0], [1], [0, 0, 1, 1], [], []>} : vector<2x128xbf16>, vector<128x128xbf16>, vector<2x128xf32> -> vector<2x128xf32>
    %c0_25 = arith.constant 0 : index
    %c0_26 = arith.constant 0 : index
    %58 = vector.load %arg5[%c0_25, %c0_26] : memref<1x128xf32, #tpu.memory_space<vmem>>, vector<1x128xf32>
    %59 = vector.broadcast %58 : vector<1x128xf32> to vector<2x128xf32>
    %60 = arith.addf %57, %59 : vector<2x128xf32>
    %c0_27 = arith.constant 0 : index
    %c0_28 = arith.constant 0 : index
    %c0_29 = arith.constant 0 : index
    %61 = vector.load %arg6[%c0_27, %c0_28, %c0_29] : memref<1x2x128xf32, #tpu.memory_space<vmem>>, vector<1x2x128xf32>
    %62 = vector.shape_cast %61 : vector<1x2x128xf32> to vector<2x128xf32>
    %63 = vector.shape_cast %60 : vector<2x128xf32> to vector<1x2x128xf32>
    tpu.vector_store %arg6[%c0_27, %c0_28, %c0_29], %63 {strides = array<i32>} : memref<1x2x128xf32, #tpu.memory_space<vmem>>, vector<1x2x128xf32>,
    return
  }
  func.func @transform_0(%arg0: i32) -> (i32, i32, i32) {
    %c0_i32 = arith.constant 0 : i32
    %c0_i32_0 = arith.constant 0 : i32
    %c0_i32_1 = arith.constant 0 : i32
    return %arg0, %c0_i32, %c0_i32_0 : i32, i32, i32
  }
  func.func @transform_1(%arg0: i32) -> (i32, i32) {
    %c0_i32 = arith.constant 0 : i32
    %c0_i32_0 = arith.constant 0 : i32
    %c0_i32_1 = arith.constant 0 : i32
    return %c0_i32, %c0_i32_0 : i32, i32
  }
  func.func @transform_2(%arg0: i32) -> (i32, i32, i32) {
    %c0_i32 = arith.constant 0 : i32
    %c0_i32_0 = arith.constant 0 : i32
    %c0_i32_1 = arith.constant 0 : i32
    %c0_i32_2 = arith.constant 0 : i32
    return %c0_i32, %c0_i32_0, %c0_i32_1 : i32, i32, i32
  }
  func.func @transform_3(%arg0: i32) -> (i32, i32) {
    %c0_i32 = arith.constant 0 : i32
    %c0_i32_0 = arith.constant 0 : i32
    %c0_i32_1 = arith.constant 0 : i32
    return %c0_i32, %c0_i32_0 : i32, i32
  }
  func.func @transform_4(%arg0: i32) -> (i32, i32) {
    %c0_i32 = arith.constant 0 : i32
    %c0_i32_0 = arith.constant 0 : i32
    %c0_i32_1 = arith.constant 0 : i32
    return %c0_i32, %c0_i32_0 : i32, i32
  }
  func.func @transform_5(%arg0: i32) -> (i32, i32, i32) {
    %c0_i32 = arith.constant 0 : i32
    %c0_i32_0 = arith.constant 0 : i32
    %c0_i32_1 = arith.constant 0 : i32
    return %arg0, %c0_i32, %c0_i32_0 : i32, i32, i32
  }
}

</mosaic_0001>

<bundles_post_ra>
// kernel: torch_model_forward.1
= control target key start
LH: loop header
LB: loop body
LE: loop exit
PB: predicated region body
PF: predicated region fallthrough
CT: control target
= control target key end

     0   :  { %v646_v2 = vmov 0   ;;  %vm68_vm12 = vsmask.f32 7424  ;;  %vm101_vm13 = vcmask 261120   ;;  %s800_s0 = inlined_call_operand.vmem [shape: bf16[1,18,32], index: 0, kind: input, shape index: {}]   ;;  %s801_s1 = inlined_call_operand.vmem [shape: s32[16,1], index: 1, kind: input, shape index: {}]   ;;  %s802_s2 = inlined_call_operand.vmem [shape: bf16[3,32,256], index: 2, kind: input, shape index: {}]   ;;  %s803_s3 = inlined_call_operand.vmem [shape: bf16[128,128], index: 3, kind: input, shape index: {}]   ;;  %s804_s4 = inlined_call_operand.vmem [shape: f32[1,128], index: 4, kind: input, shape index: {}]   ;;  %s805_s5 = inlined_call_operand.hbm [shape: f32[1,2,128], index: 5, kind: output, shape index: {}]  }
   0x1   :  { %v27_v0 = vld [vmem:[%s801_s1] sm:$0xff]  ;;  %v28_v1 = vld [vmem:[%s801_s1 + $0x8] sm:$0xff]  ;;  %585 = vset.pattern.permute.xlu1 %v646_v2  ;;  %584 = vset.pattern.permute.xlu0 %v646_v2  ;;  %v589_v9 = vld [vmem:[%s802_s2 + $0x34] ss:$8 sps:$4 sm:$0xff]  }
   0x2   :  { %v219_v3 = vadd.s32 1, %v27_v0  ;;  %v29_v4 = vadd.s32 4294967295, %v27_v0  ;;  %v220_v5 = vadd.s32 1, %v28_v1  ;;  %v30_v6 = vadd.s32 4294967295, %v28_v1  ;;  %v586_v7 = vld [vmem:[%s802_s2 + $0x24] ss:$8 sps:$4 sm:$0xff]   ;;  %137 = vmatprep.mubr.bf16.mxu0 %v646_v2 }
   0x3   :  { %v588_v8 = vld [vmem:[%s802_s2 + $0x20] ss:$8 sps:$4 sm:$0xff]   ;;  %105 = vmatprep.subr.bf16.mxu0 %v586_v7  ;;  %v591_v10 = vld [vmem:[%s802_s2 + $0x30] ss:$8 sps:$4 sm:$0xff]   ;;  %v594_v13 = vld [vmem:[%s802_s2 + $0x4] ss:$8 sps:$4 sm:$0xff]  }
   0x4   :  { %vm221_vm0 = vcmp.ge.s32.totalorder %v219_v3, 0  ;;  %vm223_vm1 = vcmp.lt.s32.totalorder %v219_v3, 8  ;;  %vm31_vm2 = vcmp.ge.s32.totalorder %v29_v4, 0  ;;  %vm33_vm3 = vcmp.lt.s32.totalorder %v29_v4, 8  ;;  %106 = vmatpush1.bf16.msra.mxu0 %v588_v8  ;;  %v710_v15 = vld [vmem:[%s800_s0] sm:$0xf] }
   0x5   :  { %vm225_vm4 = vmand %vm221_vm0, %vm223_vm1  ;;  %vm222_vm5 = vcmp.ge.s32.totalorder %v220_v5, 0  ;;  %vm224_vm6 = vcmp.lt.s32.totalorder %v220_v5, 8  ;;  %vm32_vm7 = vcmp.ge.s32.totalorder %v30_v6, 0  ;;  %vm34_vm8 = vcmp.lt.s32.totalorder %v30_v6, 8  ;;  %107 = vmatprep.subr.bf16.mxu0 %v589_v9  ;;  %v25_v16 = vld [vmem:[%s800_s0 + $0x4] sm:$0xf] }
   0x6   :  { %v227_v11 = vsel %vm225_vm4, 1, %v646_v2  ;;  %vm35_vm9 = vmand %vm31_vm2, %vm33_vm3  ;;  %v719_v18 = vld [vmem:[%s800_s0 + $0x8] sm:$0x1]  ;;  %v508_v19 = vcombine.low %v710_v15, %v25_v16  ;;  %v599_v27 = vld [vmem:[%s802_s2 + $0x14] ss:$8 sps:$4 sm:$0xff]  }
   0x7   :  { %230 = vperm.xlu1 %585, %v227_v11   ;;  %v37_v12 = vsel %vm35_vm9, 1, %v646_v2  ;;  %vm226_vm10 = vmand %vm222_vm5, %vm224_vm6  ;;  %v509_v20 = vcombine.low %v719_v18, %v719_v18  ;;  %v592_v24 = vld [vmem:[%s802_s2] ss:$8 sps:$4 sm:$0xff]   ;;  %v597_v30 = vld [vmem:[%s802_s2 + $0x10] ss:$8 sps:$4 sm:$0xff]  }
   0x8   :  { %40 = vperm.xlu0 %584, %v37_v12   ;;  %v228_v14 = vsel %vm226_vm10, 1, %v646_v2  ;;  %vm36_vm11 = vmand %vm32_vm7, %vm34_vm8  ;;  %108 = vmatpush1.bf16.msra.mxu0 %v591_v10  ;;  %v70_v21 = vshrl.u32 %v508_v19, 16  ;;  %v72_v22 = vshll.u32 %v508_v19, 16 }
   0x9   :  { %v38_v17 = vsel %vm36_vm11, 1, %v646_v2  ;;  %176 = vmatprep.subr.bf16.mxu0 %v594_v13  ;;  %v77_v23 = vshll.u32 %v509_v20, 16 }
   0xa   :  { %v74_v25 = vrot.slane %v72_v22, 1 }
   0xb   :  { %233 = vperm.xlu1 %585, %v228_v14   ;;  %v79_v26 = vrot.slane %v77_v23, 1 }
   0xc   :  { %43 = vperm.xlu0 %584, %v38_v17   ;;  %v75_v28 = vor.u32 %v74_v25, %v70_v21 }
   0xe   :  { %v80_v29 = vsel %vm68_vm12, %v75_v28, %v79_v26 }
   0xf   :  { %514 = vmatmul.mubr.msk.bf16.vlgmr.msra.gmra.mrb[0].mxu0 %vm101_vm13, %v80_v29 }
  0x10   :  { %177 = vmatpush1.bf16.msra.mxu0 %v592_v24  ;;  %208 = vmatprep.mubr.bf16.mxu0 %v646_v2 }
  0x11   :  { %10 = vsyncpa [#allocation3], 0  ;;  %178 = vmatprep.subr.bf16.mxu0 %v599_v27  ;;  %v602_v31 = vld [vmem:[%s802_s2 + $0x44] ss:$8 sps:$4 sm:$0xff]   ;;  %vm241_vm15 = vcmask 1040384   ;;  %vm242_vm0 = vcmask 1044484  }
  0x12   :  { %vm739_vm3 = vmor %vm241_vm15, %vm242_vm0  ;;  %v600_v44 = vld [vmem:[%s802_s2 + $0x40] ss:$8 sps:$4 sm:$0xff]   ;;  %v605_v46 = vld [vmem:[%s802_s2 + $0x54] ss:$8 sps:$4 sm:$0xff]   ;;  %vm268_vm12 = vcmask 1046528   ;;  %v647_v59 = vmov 0.0  }
  0x13   :  { %v603_v50 = vld [vmem:[%s802_s2 + $0x50] ss:$8 sps:$4 sm:$0xff]   ;;  %v606_v58 = vld [vmem:[%s803_s3] sm:$0xff]   ;;  %552 = vmatprep.subr.bf16.mxu1 %v647_v59  ;;  %v607_v60 = vld [vmem:[%s803_s3 + $0x8] sm:$0xff]   ;;  %s649_s14 = smov [#allocation2]  }
  0x14   :  { %179 = vmatpush1.bf16.msra.mxu0 %v597_v30  ;;  %553 = vmatpush3.bf16.msra.mxu1 %v606_v58  ;;  %v608_v61 = vld [vmem:[%s803_s3 + $0x10] sm:$0xff]   ;;  %v609_v62 = vld [vmem:[%s803_s3 + $0x18] sm:$0xff]   ;;  %v610_v63 = vld [vmem:[%s803_s3 + $0x20] sm:$0xff]   ;;  %s496_s15 = sshll.u32 %s649_s14, 4  ;;  %s497_s15 = int_to_ptr.vmem [resolvable:$true] %s496_s15 }
  0x15   :  { %295 = vmatprep.subr.bf16.mxu0 %v602_v31  ;;  %554 = vmatprep.subr.bf16.mxu1 %v647_v59  ;;  %v611_v0 = vld [vmem:[%s803_s3 + $0x28] sm:$0xff]   ;;  %v612_v1 = vld [vmem:[%s803_s3 + $0x30] sm:$0xff]   ;;  %s622_s16 = scalar_lea.vmem %s497_s15, 32  ;;  %p627_p1 = scmp.lt.s32.totalorder %s497_s15, %s497_s15 }
  0x16   :  { %p623_p0 = scmp.ne.s32.totalorder %s497_s15, %s622_s16  ;;  %p628_p2 = scmp.lt.s32.totalorder %s622_s16, %s622_s16 }
  0x18   :  { %555 = vmatpush3.bf16.msra.mxu1 %v607_v60  ;;  %p629_p3 = por %p628_p2, %p627_p1 }
  0x19   :  { %556 = vmatprep.subr.bf16.mxu1 %v647_v59 }
  0x1a   :  { %p630_p4 = pnand %p629_p3, %p623_p0 }
  0x1c   :  { %557 = vmatpush3.bf16.msra.mxu1 %v608_v61 }
  0x1d   :  { %558 = vmatprep.subr.bf16.mxu1 %v647_v59 }
  0x20   :  { %559 = vmatpush3.bf16.msra.mxu1 %v609_v62 }
  0x21   :  { %560 = vmatprep.subr.bf16.mxu1 %v647_v59 }
  0x24   :  { %561 = vmatpush3.bf16.msra.mxu1 %v610_v63 }
  0x25   :  { %562 = vmatprep.subr.bf16.mxu1 %v647_v59 }
  0x28   :  { %563 = vmatpush3.bf16.msra.mxu1 %v611_v0 }
  0x29   :  { %564 = vmatprep.subr.bf16.mxu1 %v647_v59 }
  0x2c   :  { %565 = vmatpush3.bf16.msra.mxu1 %v612_v1 }
  0x2d   :  { %566 = vmatprep.subr.bf16.mxu1 %v647_v59 }
  0x86   :  { %v231_v32 = vpop.permute.xlu1 %230 }
  0x87   :  { %vm235_vm14 = vcmp.eq.s32.totalorder %v231_v32, 1  ;;  %v41_v33 = vpop.permute.xlu0 %40 }
  0x88   :  { %vm237_vm1 = vmpackc.low %vm235_vm14, %vm235_vm14  ;;  %vm45_vm2 = vcmp.eq.s32.totalorder %v41_v33, 1  ;;  %vm397_vm14 = vcmask 1041409  }
  0x89   :  { %v239_v34 = vsel %vm237_vm1, 65537, %v646_v2  ;;  %vm47_vm4 = vmpackc.low %vm45_vm2, %vm45_vm2 }
  0x8a   :  { %v244_v35 = vrot.slane %v239_v34, 7  ;;  %v234_v37 = vpop.permute.xlu1 %233  ;;  %v49_v41 = vsel %vm47_vm4, %v710_v15, 0 }
  0x8b   :  { %vm236_vm5 = vcmp.eq.s32.totalorder %v234_v37, 1  ;;  %v44_v38 = vpop.permute.xlu0 %43 }
  0x8c   :  { %v245_v39 = vrot.slane %v244_v35, 4  ;;  %vm238_vm6 = vmpackc.low %vm236_vm5, %vm236_vm5  ;;  %vm46_vm7 = vcmp.eq.s32.totalorder %v44_v38, 1  ;;  %vm249_vm9 = vcmp.ne.s16.totalorder %v244_v35, 0  ;;  %v534_v35 = vld [vmem:[%s804_s4] ss:$0 sm:$0xff] }
  0x8d   :  { %v240_v40 = vsel %vm238_vm6, 65537, %v646_v2  ;;  %vm48_vm8 = vmpackc.low %vm46_vm7, %vm46_vm7  ;;  %v252_v51 = vsel %vm249_vm9, %v710_v15, 0 }
  0x8e   :  { %v246_v42 = vrot.slane %v240_v40, 7  ;;  %v50_v43 = vsel %vm48_vm8, %v25_v16, 0 }
  0x8f   :  { %v515_v45 = vcombine.low %v49_v41, %v50_v43 }
  0x90   :  { %v247_v47 = vsel %vm739_vm3, %v245_v39, %v246_v42  ;;  %v248_v48 = vrot.slane %v246_v42, 4 }
  0x91   :  { %vm250_vm10 = vcmp.ne.s16.totalorder %v247_v47, 0  ;;  %520 = vmatmul.mubr.msk.bf16.vlgmr.msra.gmra.mrb[0].mxu0 %vm101_vm13, %v515_v45 }
  0x92   :  { %vm251_vm11 = vcmp.ne.s16.totalorder %v248_v48, 0  ;;  %v253_v49 = vsel %vm250_vm10, %v25_v16, 0  ;;  %296 = vmatpush1.bf16.msra.mxu0 %v600_v44  ;;  %327 = vmatprep.mubr.bf16.mxu0 %v646_v2  ;;  %v613_v2 = vld [vmem:[%s803_s3 + $0x38] sm:$0xff]  }
  0x93   :  { %v254_v52 = vsel %vm251_vm11, %v719_v18, 0  ;;  %297 = vmatprep.subr.bf16.mxu0 %v605_v46  ;;  %v525_v53 = vcombine.low %v252_v51, %v253_v49  ;;  %567 = vmatpush3.bf16.msra.mxu1 %v613_v2 }
  0x94   :  { %v526_v54 = vcombine.low %v254_v52, %v254_v52 }
  0x95   :  { %v269_v55 = vrot.slane %v525_v53, 1 }
  0x96   :  { %298 = vmatpush1.bf16.msra.mxu0 %v603_v50  ;;  %v270_v56 = vrot.slane %v526_v54, 1 }
  0x98   :  { %v271_v57 = vsel %vm268_vm12, %v269_v55, %v270_v56 }
  0x9d   :  { %531 = vmatmul.mubr.msk.bf16.vlgmr.msra.gmra.mrb[0].mxu0 %vm101_vm13, %v271_v57  ;;  %vm648_vm13 = vmmov 0  }
  0x9e   :  { %568 = vmatprep.mubr.msk.bf16.mxu1 %vm648_vm13, %v647_v59 }
 0x170   :  { %v329_v3 = vpop.f32.mrb[0].mxu0 }
 0x171   :  { %v331_v4 = vpop.f32.mrb[1].mxu0 }
 0x172   :  { %v532_v5 = vmul.f32 -1.442695, %v331_v4  ;;  %v333_v6 = vpop.f32.mrb[2].mxu0 }
 0x173   :  { %v335_v7 = vpop.f32.mrb[3].mxu0 }
 0x174   :  { %614 = vpow2.f32 %v532_v5  ;;  %v533_v8 = vmul.f32 -1.442695, %v335_v7 }
 0x176   :  { %616 = vpow2.f32 %v533_v8 }
 0x17e   :  { %v615_v9 = vpop.eup %614 }
 0x17f   :  { %v348_v10 = vadd.f32 1.0, %v615_v9 }
 0x180   :  { %v617_v11 = vpop.eup %616 }
 0x181   :  { %618 = vrcp.f32 %v348_v10  ;;  %v349_v12 = vadd.f32 1.0, %v617_v11 }
 0x183   :  { %620 = vrcp.f32 %v349_v12 }
 0x18b   :  { %v619_v13 = vpop.eup %618 }
 0x18c   :  { %v354_v14 = vmul.f32 %v619_v13, %v329_v3 }
 0x18d   :  { %v621_v15 = vpop.eup %620 }
 0x18e   :  { %v355_v16 = vmul.f32 %v621_v15, %v333_v6  ;;  %v356_v17 = vrot.slane %v354_v14, 4 }
 0x190   :  { %v357_v18 = vmax.f32 %v354_v14, %v356_v17  ;;  %v362_v19 = vrot.slane %v355_v16, 4 }
 0x192   :  { %v358_v20 = vrot.slane %v357_v18, 2  ;;  %v363_v21 = vmax.f32 %v355_v16, %v362_v19 }
 0x194   :  { %v359_v22 = vmax.f32 %v357_v18, %v358_v20  ;;  %v364_v23 = vrot.slane %v363_v21, 2 }
 0x196   :  { %v360_v24 = vrot.slane %v359_v22, 1  ;;  %v365_v25 = vmax.f32 %v363_v21, %v364_v23 }
 0x198   :  { %v361_v26 = vmax.f32 %v359_v22, %v360_v24  ;;  %v366_v27 = vrot.slane %v365_v25, 1 }
 0x19a   :  { %v367_v28 = vmax.f32 %v365_v25, %v366_v27  ;;  %v368_v29 = vpack.c.bf16 %v361_v26, %v361_v26 }
 0x19c   :  { %v369_v30 = vpack.c.bf16 %v367_v28, %v367_v28  ;;  %v395_v31 = vunpack.c.l.b16 %v368_v29 }
 0x19e   :  { %v396_v32 = vunpack.c.l.b16 %v369_v30 }
 0x1a0   :  { %v398_v33 = vsel %vm397_vm14, %v396_v32, %v395_v31 }
 0x1a1   :  { %v399_v34 = vpack.c.b16 %v398_v33, %v398_v33 }
 0x1a3   :  { %569 = vmatmul.mubr.bf16.vlgmr.msra.gmra.mrb[0].mxu1 %v399_v34 }
 0x276   :  { %v483_v36 = vpop.f32.mrb[0].mxu1 }
 0x277   :  { %v484_v37 = vadd.f32 %v534_v35, %v483_v36  ;;  %v570_v38 = vpop.f32.mrb[1].mxu1 }
 0x278   :  { %v486_v39 = vpop.f32.mrb[2].mxu1 }
 0x279   :  { %489 = vst [vmem:[#allocation2] sm:$0x3] %v484_v37  ;;  %v571_v40 = vpop.f32.mrb[3].mxu1 }
 0x27a   :  { %633 = shalt.err (!%p630_p4)
}
 0x27b   :  { %s634_s4 = scalar_lea.hbm %s805_s5, 32 }
 0x27c   :  { %p635_p5 = scmp.ne.s32.totalorder %s805_s5, %s634_s4  ;;  %p638_p6 = scmp.lt.u32.totalorder %s634_s4, %s805_s5 }
 0x27e   :  { %p640_p7 = pnand %p638_p6, %p635_p5 }
 0x280   :  { %643 = shalt.err (!%p640_p7)
}
 0x281   :  { %499 = dma.vmem_to_hbm [thread:$0]  %s497_s15, 32, %s805_s5, [#allocation3]  }
 0x282   :  { %644 = dma.done.wait [#allocation3], 32  }
 0x283   :  { %645 = vsyncadd [#allocation3], 4294967264 }
 0x284   :  { %503 = vsyncpa [#allocation3], 1 }

</bundles_post_ra>
